<compile_context>
chip_gen: v7x
topology: tpu7x:2x2x1
jax: 0.10.0
libtpu: 0.0.40
codegen_flags: <defaults>
</compile_context>

<pallas_src>
import jax
import jax.numpy as jnp
from jax.experimental import pallas as pl
from jax.experimental.pallas import tpu as pltpu


N_HEAD_LOGITS = 9   # 2 (abusive) + 3 (sentiment) + 2 (sarcasm) + 2 (vulgar)
HEAD_PAD = 16       # zero-padded fused-head width (sliced back to 9 in wrapper)


def _round_up(x, m):
    return ((x + m - 1) // m) * m


def uni_model_kernel(xt_ref, xv_ref, w1t_ref, w1v_ref, b1_ref,
                     w2_ref, b2_ref, wh_ref, bh_ref, out_ref):
    # xt_ref : (TILE_B, D_TEXT) bf16     xv_ref : (TILE_B, D_VID) bf16
    # w1t_ref: (D_TEXT, FC1) bf16        w1v_ref: (D_VID, FC1) bf16   b1_ref: (1, FC1) f32
    # w2_ref : (FC1, FC2) bf16           b2_ref : (1, FC2) f32
    # wh_ref : (FC2, HEAD_PAD) bf16      bh_ref : (1, HEAD_PAD) f32
    # out_ref: (TILE_B, HEAD_PAD) f32
    #
    # Matmuls run in bf16 on the MXU with f32 accumulation; bias/ReLU in f32.
    h1 = (jnp.dot(xt_ref[...], w1t_ref[...], preferred_element_type=jnp.float32)
          + jnp.dot(xv_ref[...], w1v_ref[...], preferred_element_type=jnp.float32)
          + b1_ref[...])
    h1 = jnp.maximum(h1, 0.0)                                     # ReLU (f32)

    h2 = jnp.dot(h1.astype(w2_ref.dtype), w2_ref[...],
                 preferred_element_type=jnp.float32) + b2_ref[...]
    h2 = jnp.maximum(h2, 0.0)                                     # ReLU (f32)

    out_ref[...] = (jnp.dot(h2.astype(wh_ref.dtype), wh_ref[...],
                            preferred_element_type=jnp.float32) + bh_ref[...])


def uni_model_forward(x_text, x_vid, params, *, tile_b=512):
    """Fused Uni_Model forward as one batch-tiled Pallas kernel."""
    w1t, w1v, b1, w2, b2, wh, bh = params
    B = x_text.shape[0]
    d_text, fc1 = w1t.shape
    d_vid = w1v.shape[0]
    fc2 = w2.shape[1]
    head_pad = wh.shape[1]

    # Tile the batch; keep tiles a multiple of 8 (sublane) and pad B up to a
    # whole number of tiles (padded rows sliced off below).
    tile_b = min(tile_b, _round_up(max(B, 1), 8))
    b_pad = _round_up(B, tile_b)
    num_tiles = b_pad // tile_b

    # Pad batch and cast MXU inputs to bf16 (halves activation HBM traffic).
    xt = jnp.pad(x_text, ((0, b_pad - B), (0, 0))).astype(jnp.bfloat16)
    xv = jnp.pad(x_vid, ((0, b_pad - B), (0, 0))).astype(jnp.bfloat16)
    w1t_b = w1t.astype(jnp.bfloat16)
    w1v_b = w1v.astype(jnp.bfloat16)
    w2_b = w2.astype(jnp.bfloat16)
    wh_b = wh.astype(jnp.bfloat16)

    flops = 2 * b_pad * (d_text * fc1 + d_vid * fc1 + fc1 * fc2 + fc2 * head_pad)
    bytes_accessed = (
        b_pad * (d_text + d_vid) * 2                                   # bf16 acts in
        + b_pad * head_pad * 4                                         # f32 logits out
        + (d_text * fc1 + d_vid * fc1 + fc1 * fc2 + fc2 * head_pad) * 2  # bf16 weights
        + (fc1 + fc2 + head_pad) * 4                                   # f32 biases
    )

    def _weight_spec(shape):
        # Constant block index -> weights stay resident in VMEM across the grid.
        return pl.BlockSpec(shape, lambda i: (0, 0))

    out = pl.pallas_call(
        uni_model_kernel,
        out_shape=jax.ShapeDtypeStruct((b_pad, head_pad), jnp.float32),
        grid=(num_tiles,),
        in_specs=[
            pl.BlockSpec((tile_b, d_text), lambda i: (i, 0)),   # x_text tile
            pl.BlockSpec((tile_b, d_vid), lambda i: (i, 0)),    # x_vid tile
            _weight_spec((d_text, fc1)),                        # w1 (text rows)
            _weight_spec((d_vid, fc1)),                         # w1 (video rows)
            _weight_spec((1, fc1)),                             # b1
            _weight_spec((fc1, fc2)),                           # w2
            _weight_spec((1, fc2)),                             # b2
            _weight_spec((fc2, head_pad)),                      # fused heads W (padded)
            _weight_spec((1, head_pad)),                        # fused heads b (padded)
        ],
        out_specs=pl.BlockSpec((tile_b, head_pad), lambda i: (i, 0)),
        compiler_params=pltpu.CompilerParams(
            dimension_semantics=("parallel",)),                 # 2-TC sharding on v7x
        cost_estimate=pl.CostEstimate(
            flops=flops, transcendentals=0, bytes_accessed=bytes_accessed),
    )(xt, xv, w1t_b, w1v_b, b1, w2_b, b2, wh_b, bh)

    out = out[:B, :N_HEAD_LOGITS]                               # drop pad rows/cols
    abusive_out = out[:, 0:2]
    sentiment_out = out[:, 2:5]
    sarcasm_out = out[:, 5:7]
    vulgar_out = out[:, 7:9]
    return abusive_out, sentiment_out, sarcasm_out, vulgar_out


def init_params(key, d_text, d_vid, fc1_hidden, fc2_hidden):
    """Deterministic synthetic parameters (shapes follow the PyTorch module)."""
    input_size = d_text + d_vid
    ks = jax.random.split(key, 12)

    def linear(kw, kb, n_in, n_out):
        # PyTorch Linear weight is (out, in); we store transposed (in, out).
        bound = 1.0 / jnp.sqrt(jnp.float32(n_in))
        w = jax.random.uniform(kw, (n_in, n_out), jnp.float32, -bound, bound)
        b = jax.random.uniform(kb, (1, n_out), jnp.float32, -bound, bound)
        return w, b

    w1, b1 = linear(ks[0], ks[1], input_size, fc1_hidden)
    w2, b2 = linear(ks[2], ks[3], fc1_hidden, fc2_hidden)
    wa, ba = linear(ks[4], ks[5], fc2_hidden, 2)    # abusive
    ws, bs = linear(ks[6], ks[7], fc2_hidden, 3)    # sentiment
    wr, br = linear(ks[8], ks[9], fc2_hidden, 2)    # sarcasm
    wv, bv = linear(ks[10], ks[11], fc2_hidden, 2)  # vulgar

    # Split w1 along its input dim: replaces the wrapper-side concat of
    # (x_text | x_vid) with two partial dots into the same accumulator.
    w1t, w1v = w1[:d_text], w1[d_text:]

    # Fuse the 4 heads into one matmul and zero-pad 9 -> HEAD_PAD columns.
    wh = jnp.concatenate([wa, ws, wr, wv], axis=1)
    bh = jnp.concatenate([ba, bs, br, bv], axis=1)
    wh = jnp.pad(wh, ((0, 0), (0, HEAD_PAD - wh.shape[1])))
    bh = jnp.pad(bh, ((0, 0), (0, HEAD_PAD - bh.shape[1])))
    return (w1t, w1v, b1, w2, b2, wh, bh)


def reference_forward(x_text, x_vid, params):
    """Pure-JAX f32 reference matching the PyTorch module exactly."""
    w1t, w1v, b1, w2, b2, wh, bh = params
    x = jnp.concatenate([x_text, x_vid], axis=1)
    w1 = jnp.concatenate([w1t, w1v], axis=0)
    h1 = jnp.maximum(x @ w1 + b1, 0.0)
    h2 = jnp.maximum(h1 @ w2 + b2, 0.0)
    out = (h2 @ wh + bh)[:, :N_HEAD_LOGITS]
    return out[:, 0:2], out[:, 2:5], out[:, 5:7], out[:, 7:9]


if __name__ == "__main__":
    # Small shapes consistent with the module's forward.
    B = 4
    D_TEXT, D_VID = 16, 16
    FC1_HIDDEN, FC2_HIDDEN = 32, 32

    key = jax.random.PRNGKey(0)
    k_text, k_vid, k_params = jax.random.split(key, 3)
    x_text = jax.random.normal(k_text, (B, D_TEXT), jnp.float32)
    x_vid = jax.random.normal(k_vid, (B, D_VID), jnp.float32)
    params = init_params(k_params, D_TEXT, D_VID, FC1_HIDDEN, FC2_HIDDEN)

    outs = uni_model_forward(x_text, x_vid, params)
    outs = jax.block_until_ready(outs)

    # Sanity-check against pure-JAX f32 reference (bf16 matmul tolerance).
    refs = reference_forward(x_text, x_vid, params)
    for o, r in zip(outs, refs):
        assert o.shape == r.shape
        assert jnp.allclose(o, r, atol=5e-2, rtol=5e-2)

    print("KERNEL_OK")
</pallas_src>

<mosaic_0001>
module attributes {stable_mosaic.version = 11 : i64} {
  func.func @uni_model_kernel(%arg0: i32, %arg1: memref<8x16xbf16, #tpu.memory_space<vmem>>, %arg2: memref<8x16xbf16, #tpu.memory_space<vmem>>, %arg3: memref<16x32xbf16, #tpu.memory_space<vmem>>, %arg4: memref<16x32xbf16, #tpu.memory_space<vmem>>, %arg5: memref<1x32xf32, #tpu.memory_space<vmem>>, %arg6: memref<32x32xbf16, #tpu.memory_space<vmem>>, %arg7: memref<1x32xf32, #tpu.memory_space<vmem>>, %arg8: memref<32x16xbf16, #tpu.memory_space<vmem>>, %arg9: memref<1x16xf32, #tpu.memory_space<vmem>>, %arg10: memref<8x16xf32, #tpu.memory_space<vmem>>) attributes {dimension_semantics = [#tpu.dimension_semantics<parallel>], iteration_bounds = array<i64: 1>, scalar_prefetch = 0 : i64, scratch_operands = 0 : i64, tpu.core_type = #tpu.core_type<tc>, window_params = [{transform_indices = @transform_0, window_bounds = array<i64: 8, 16>}, {transform_indices = @transform_1, window_bounds = array<i64: 8, 16>}, {pipeline_mode = #tpu.pipeline_mode<synchronous>, transform_indices = @transform_2, window_bounds = array<i64: 16, 32>}, {pipeline_mode = #tpu.pipeline_mode<synchronous>, transform_indices = @transform_3, window_bounds = array<i64: 16, 32>}, {pipeline_mode = #tpu.pipeline_mode<synchronous>, transform_indices = @transform_4, window_bounds = array<i64: 1, 32>}, {pipeline_mode = #tpu.pipeline_mode<synchronous>, transform_indices = @transform_5, window_bounds = array<i64: 32, 32>}, {pipeline_mode = #tpu.pipeline_mode<synchronous>, transform_indices = @transform_6, window_bounds = array<i64: 1, 32>}, {pipeline_mode = #tpu.pipeline_mode<synchronous>, transform_indices = @transform_7, window_bounds = array<i64: 32, 16>}, {pipeline_mode = #tpu.pipeline_mode<synchronous>, transform_indices = @transform_8, window_bounds = array<i64: 1, 16>}, {transform_indices = @transform_9, window_bounds = array<i64: 8, 16>}]} {
    %c0 = arith.constant 0 : index
    %c0_0 = arith.constant 0 : index
    %0 = vector.load %arg1[%c0, %c0_0] : memref<8x16xbf16, #tpu.memory_space<vmem>>, vector<8x16xbf16>
    %c0_1 = arith.constant 0 : index
    %c0_2 = arith.constant 0 : index
    %1 = vector.load %arg3[%c0_1, %c0_2] : memref<16x32xbf16, #tpu.memory_space<vmem>>, vector<16x32xbf16>
    %cst = arith.constant dense<0.000000e+00> : vector<8x32xf32>
    %2 = tpu.matmul %0, %1, %cst {dimension_numbers = #tpu.dot_dimension_numbers<[1], [0], [0], [1], [0, 0, 1, 1], [], []>} : vector<8x16xbf16>, vector<16x32xbf16>, vector<8x32xf32> -> vector<8x32xf32>
    %c0_3 = arith.constant 0 : index
    %c0_4 = arith.constant 0 : index
    %3 = vector.load %arg2[%c0_3, %c0_4] : memref<8x16xbf16, #tpu.memory_space<vmem>>, vector<8x16xbf16>
    %c0_5 = arith.constant 0 : index
    %c0_6 = arith.constant 0 : index
    %4 = vector.load %arg4[%c0_5, %c0_6] : memref<16x32xbf16, #tpu.memory_space<vmem>>, vector<16x32xbf16>
    %cst_7 = arith.constant dense<0.000000e+00> : vector<8x32xf32>
    %5 = tpu.matmul %3, %4, %cst_7 {dimension_numbers = #tpu.dot_dimension_numbers<[1], [0], [0], [1], [0, 0, 1, 1], [], []>} : vector<8x16xbf16>, vector<16x32xbf16>, vector<8x32xf32> -> vector<8x32xf32>
    %6 = arith.addf %2, %5 : vector<8x32xf32>
    %c0_8 = arith.constant 0 : index
    %c0_9 = arith.constant 0 : index
    %7 = vector.load %arg5[%c0_8, %c0_9] : memref<1x32xf32, #tpu.memory_space<vmem>>, vector<1x32xf32>
    %8 = vector.broadcast %7 : vector<1x32xf32> to vector<8x32xf32>
    %9 = arith.addf %6, %8 : vector<8x32xf32>
    %cst_10 = arith.constant 0.000000e+00 : f32
    %10 = vector.broadcast %cst_10 : f32 to vector<8x32xf32>
    %11 = arith.maximumf %9, %10 : vector<8x32xf32>
    %12 = arith.truncf %11 : vector<8x32xf32> to vector<8x32xbf16>
    %c0_11 = arith.constant 0 : index
    %c0_12 = arith.constant 0 : index
    %13 = vector.load %arg6[%c0_11, %c0_12] : memref<32x32xbf16, #tpu.memory_space<vmem>>, vector<32x32xbf16>
    %cst_13 = arith.constant dense<0.000000e+00> : vector<8x32xf32>
    %14 = tpu.matmul %12, %13, %cst_13 {dimension_numbers = #tpu.dot_dimension_numbers<[1], [0], [0], [1], [0, 0, 1, 1], [], []>} : vector<8x32xbf16>, vector<32x32xbf16>, vector<8x32xf32> -> vector<8x32xf32>
    %c0_14 = arith.constant 0 : index
    %c0_15 = arith.constant 0 : index
    %15 = vector.load %arg7[%c0_14, %c0_15] : memref<1x32xf32, #tpu.memory_space<vmem>>, vector<1x32xf32>
    %16 = vector.broadcast %15 : vector<1x32xf32> to vector<8x32xf32>
    %17 = arith.addf %14, %16 : vector<8x32xf32>
    %cst_16 = arith.constant 0.000000e+00 : f32
    %18 = vector.broadcast %cst_16 : f32 to vector<8x32xf32>
    %19 = arith.maximumf %17, %18 : vector<8x32xf32>
    %20 = arith.truncf %19 : vector<8x32xf32> to vector<8x32xbf16>
    %c0_17 = arith.constant 0 : index
    %c0_18 = arith.constant 0 : index
    %21 = vector.load %arg8[%c0_17, %c0_18] : memref<32x16xbf16, #tpu.memory_space<vmem>>, vector<32x16xbf16>
    %cst_19 = arith.constant dense<0.000000e+00> : vector<8x16xf32>
    %22 = tpu.matmul %20, %21, %cst_19 {dimension_numbers = #tpu.dot_dimension_numbers<[1], [0], [0], [1], [0, 0, 1, 1], [], []>} : vector<8x32xbf16>, vector<32x16xbf16>, vector<8x16xf32> -> vector<8x16xf32>
    %c0_20 = arith.constant 0 : index
    %c0_21 = arith.constant 0 : index
    %23 = vector.load %arg9[%c0_20, %c0_21] : memref<1x16xf32, #tpu.memory_space<vmem>>, vector<1x16xf32>
    %24 = vector.broadcast %23 : vector<1x16xf32> to vector<8x16xf32>
    %25 = arith.addf %22, %24 : vector<8x16xf32>
    %c0_22 = arith.constant 0 : index
    %c0_23 = arith.constant 0 : index
    %26 = vector.load %arg10[%c0_22, %c0_23] : memref<8x16xf32, #tpu.memory_space<vmem>>, vector<8x16xf32>
    tpu.vector_store %arg10[%c0_22, %c0_23], %25 {strides = array<i32>} : memref<8x16xf32, #tpu.memory_space<vmem>>, vector<8x16xf32>,
    return
  }
  func.func @transform_0(%arg0: i32) -> (i32, i32) {
    %c0_i32 = arith.constant 0 : i32
    %c0_i32_0 = arith.constant 0 : i32
    return %arg0, %c0_i32 : i32, i32
  }
  func.func @transform_1(%arg0: i32) -> (i32, i32) {
    %c0_i32 = arith.constant 0 : i32
    %c0_i32_0 = arith.constant 0 : i32
    return %arg0, %c0_i32 : i32, i32
  }
  func.func @transform_2(%arg0: i32) -> (i32, i32) {
    %c0_i32 = arith.constant 0 : i32
    %c0_i32_0 = arith.constant 0 : i32
    %c0_i32_1 = arith.constant 0 : i32
    return %c0_i32, %c0_i32_0 : i32, i32
  }
  func.func @transform_3(%arg0: i32) -> (i32, i32) {
    %c0_i32 = arith.constant 0 : i32
    %c0_i32_0 = arith.constant 0 : i32
    %c0_i32_1 = arith.constant 0 : i32
    return %c0_i32, %c0_i32_0 : i32, i32
  }
  func.func @transform_4(%arg0: i32) -> (i32, i32) {
    %c0_i32 = arith.constant 0 : i32
    %c0_i32_0 = arith.constant 0 : i32
    %c0_i32_1 = arith.constant 0 : i32
    return %c0_i32, %c0_i32_0 : i32, i32
  }
  func.func @transform_5(%arg0: i32) -> (i32, i32) {
    %c0_i32 = arith.constant 0 : i32
    %c0_i32_0 = arith.constant 0 : i32
    %c0_i32_1 = arith.constant 0 : i32
    return %c0_i32, %c0_i32_0 : i32, i32
  }
  func.func @transform_6(%arg0: i32) -> (i32, i32) {
    %c0_i32 = arith.constant 0 : i32
    %c0_i32_0 = arith.constant 0 : i32
    %c0_i32_1 = arith.constant 0 : i32
    return %c0_i32, %c0_i32_0 : i32, i32
  }
  func.func @transform_7(%arg0: i32) -> (i32, i32) {
    %c0_i32 = arith.constant 0 : i32
    %c0_i32_0 = arith.constant 0 : i32
    %c0_i32_1 = arith.constant 0 : i32
    return %c0_i32, %c0_i32_0 : i32, i32
  }
  func.func @transform_8(%arg0: i32) -> (i32, i32) {
    %c0_i32 = arith.constant 0 : i32
    %c0_i32_0 = arith.constant 0 : i32
    %c0_i32_1 = arith.constant 0 : i32
    return %c0_i32, %c0_i32_0 : i32, i32
  }
  func.func @transform_9(%arg0: i32) -> (i32, i32) {
    %c0_i32 = arith.constant 0 : i32
    %c0_i32_0 = arith.constant 0 : i32
    return %arg0, %c0_i32 : i32, i32
  }
}

</mosaic_0001>

<bundles_post_ra>
// kernel: tpu_custom_call.1
= control target key start
LH: loop header
LB: loop body
LE: loop exit
PB: predicated region body
PF: predicated region fallthrough
CT: control target
= control target key end

     0   :  { %14 = vsyncpa [#allocation3], 0  ;;  %s593_s0 = inlined_call_operand.vmem [shape: bf16[8,16], index: 0, kind: input, shape index: {}]   ;;  %s594_s1 = inlined_call_operand.hbm [shape: bf16[8,16], index: 1, kind: input, shape index: {}]   ;;  %s595_s2 = inlined_call_operand.vmem [shape: bf16[16,32], index: 2, kind: input, shape index: {}]   ;;  %s596_s3 = inlined_call_operand.hbm [shape: bf16[16,32], index: 3, kind: input, shape index: {}]   ;;  %s597_s4 = inlined_call_operand.vmem [shape: f32[1,32], index: 4, kind: input, shape index: {}]   ;;  %s598_s5 = inlined_call_operand.vmem [shape: bf16[32,32], index: 5, kind: input, shape index: {}]   ;;  %s599_s6 = inlined_call_operand.vmem [shape: f32[1,32], index: 6, kind: input, shape index: {}]   ;;  %s600_s7 = inlined_call_operand.vmem [shape: bf16[32,16], index: 7, kind: input, shape index: {}]   ;;  %s601_s8 = inlined_call_operand.vmem [shape: f32[1,16], index: 8, kind: input, shape index: {}]   ;;  %s602_s9 = inlined_call_operand.hbm [shape: f32[8,16], index: 9, kind: output, shape index: {}]  }
   0x1   :  { %15 = vsyncpa [#allocation6], 0 }
   0x2   :  { %16 = vsyncpa [#allocation4], 0  ;;  %s463_s30 = smov [#allocation2]   ;;  %s464_s11 = smov [#allocation5]  }
   0x3   :  { %s25_s10 = sshll.u32 %s463_s30, 4  ;;  %s36_s12 = sshll.u32 %s464_s11, 4  ;;  %s26_s10 = int_to_ptr.vmem [resolvable:$true] %s25_s10  ;;  %s520_s12 = int_to_ptr.vmem [resolvable:$true] %s36_s12 }
   0x4   :  { %s391_s15 = scalar_lea.hbm %s594_s1, 64 }
   0x5   :  { %p392_p0 = scmp.ne.s32.totalorder %s594_s1, %s391_s15  ;;  %p395_p1 = scmp.lt.u32.totalorder %s391_s15, %s594_s1 }
   0x7   :  { %p397_p2 = pnand %p395_p1, %p392_p0 }
   0x9   :  { %400 = shalt.err (!%p397_p2)
}
   0xa   :  { %s401_s20 = scalar_lea.vmem %s26_s10, 64  ;;  %p406_p4 = scmp.lt.s32.totalorder %s26_s10, %s26_s10 }
   0xb   :  { %p402_p3 = scmp.ne.s32.totalorder %s26_s10, %s401_s20  ;;  %p407_p5 = scmp.lt.s32.totalorder %s401_s20, %s401_s20 }
   0xd   :  { %p408_p6 = por %p407_p5, %p406_p4 }
   0xf   :  { %p409_p7 = pnand %p408_p6, %p402_p3 }
  0x11   :  { %412 = shalt.err (!%p409_p7)
}
  0x12   :  { %28 = dma.hbm_to_vmem [thread:$0]  %s594_s1, 64, %s26_s10, [#allocation3]  }
  0x13   :  { %s413_s25 = scalar_lea.hbm %s596_s3, 128 }
  0x14   :  { %p414_p8 = scmp.ne.s32.totalorder %s596_s3, %s413_s25  ;;  %p417_p9 = scmp.lt.u32.totalorder %s413_s25, %s596_s3 }
  0x16   :  { %p419_p10 = pnand %p417_p9, %p414_p8 }
  0x18   :  { %422 = shalt.err (!%p419_p10)
}
  0x19   :  { %s423_s30 = scalar_lea.vmem %s520_s12, 128  ;;  %p428_p12 = scmp.lt.s32.totalorder %s520_s12, %s520_s12 }
  0x1a   :  { %p424_p11 = scmp.ne.s32.totalorder %s520_s12, %s423_s30  ;;  %p429_p13 = scmp.lt.s32.totalorder %s423_s30, %s423_s30 }
  0x1c   :  { %p430_p0 = por %p429_p13, %p428_p12 }
  0x1e   :  { %p431_p1 = pnand %p430_p0, %p424_p11 }
  0x20   :  { %434 = shalt.err (!%p431_p1)
}
  0x21   :  { %s465_s1 = smov 64   ;;  %s466_s10 = smov 4  }
  0x22   :  { %42 = dma.hbm_to_vmem [thread:$0]  %s596_s3, 128, %s520_s12, [#allocation6], %s465_s1, %s465_s1, %s466_s10  }
  0x23   :  { %457 = dma.done.wait [#allocation3], 64  }
  0x24   :  { %458 = vsyncadd [#allocation3], 4294967232 }
  0x25   :  { %459 = dma.done.wait [#allocation6], 128  }
  0x26   :  { %460 = vsyncadd [#allocation6], 4294967168  ;;  %v467_v0 = vmov 0.0   ;;  %vm468_vm0 = vmmov 0   ;;  %v385_v1 = vld [vmem:[#allocation5] sm:$0xff]   ;;  %vm72_vm1 = vcmask 130048  }
  0x27   :  { %350 = vmatprep.subr.bf16.mxu0 %v467_v0  ;;  %356 = vmatprep.subr.bf16.mxu1 %v467_v0  ;;  %v386_v2 = vld [vmem:[%s595_s2] sm:$0xff]   ;;  %v388_v6 = vld [vmem:[%s598_s5 + $0x8] sm:$0xff]   ;;  %vm198_vm2 = vcmask 261120   ;;  %s469_s26 = smov [#allocation7]  }
  0x28   :  { %352 = vmatprep.mubr.msk.bf16.mxu0 %vm468_vm0, %v467_v0  ;;  %358 = vmatprep.mubr.msk.bf16.mxu1 %vm468_vm0, %v467_v0  ;;  %v63_v3 = vld [vmem:[#allocation2] sm:$0xf]  ;;  %v390_v21 = vld [vmem:[%s600_s7 + $0x8] sm:$0xff]   ;;  %s317_s27 = sshll.u32 %s469_s26, 4  ;;  %s318_s27 = int_to_ptr.vmem [resolvable:$true] %s317_s27 }
  0x29   :  { %351 = vmatpush3.bf16.msra.mxu0 %v385_v1  ;;  %v60_v4 = vld [vmem:[%s593_s0] sm:$0xf]  ;;  %357 = vmatpush3.bf16.msra.mxu1 %v386_v2  ;;  %p440_p3 = scmp.lt.s32.totalorder %s318_s27, %s318_s27 }
  0x2a   :  { %362 = vmatprep.subr.bf16.mxu0 %v467_v0  ;;  %370 = vmatprep.subr.bf16.mxu1 %v467_v0  ;;  %v387_v5 = vld [vmem:[%s598_s5] sm:$0xff]  }
  0x2b   :  { %v389_v7 = vld [vmem:[%s600_s7] sm:$0xff]  }
  0x2c   :  { %353 = vmatmul.mubr.msk.bf16.vlgmr.msra.gmra.mrb[0].mxu0 %vm72_vm1, %v63_v3  ;;  %359 = vmatmul.mubr.msk.bf16.vlgmr.msra.gmra.mrb[0].mxu1 %vm72_vm1, %v60_v4  ;;  %v331_v10 = vld [vmem:[%s597_s4] ss:$0 sm:$0xff] }
  0x2d   :  { %366 = vmatprep.mubr.msk.bf16.mxu0 %vm468_vm0, %v467_v0  ;;  %374 = vmatprep.mubr.msk.bf16.mxu1 %vm468_vm0, %v467_v0  ;;  %v332_v22 = vld [vmem:[%s599_s6] ss:$0 sm:$0xff]  ;;  %s435_s6 = scalar_lea.vmem %s318_s27, 128 }
  0x2e   :  { %363 = vmatpush3.bf16.msra.mxu0 %v387_v5  ;;  %371 = vmatpush3.bf16.msra.mxu1 %v389_v7  ;;  %v336_v30 = vld [vmem:[%s601_s8] ss:$0 sm:$0xff]  ;;  %p436_p2 = scmp.ne.s32.totalorder %s318_s27, %s435_s6  ;;  %p441_p4 = scmp.lt.s32.totalorder %s435_s6, %s435_s6 }
  0x2f   :  { %364 = vmatprep.subr.bf16.mxu0 %v467_v0  ;;  %372 = vmatprep.subr.bf16.mxu1 %v467_v0 }
  0x30   :  { %p442_p5 = por %p441_p4, %p440_p3 }
  0x32   :  { %365 = vmatpush3.bf16.msra.mxu0 %v388_v6  ;;  %373 = vmatpush3.bf16.msra.mxu1 %v390_v21  ;;  %p443_p6 = pnand %p442_p5, %p436_p2 }
  0xff   :  { %v110_v8 = vpop.f32.mrb[0].mxu0  ;;  %v159_v9 = vpop.f32.mrb[0].mxu1 }
 0x100   :  { %v354_v11 = vpop.f32.mrb[1].mxu0  ;;  %v160_v12 = vadd.f32 %v159_v9, %v110_v8  ;;  %v360_v13 = vpop.f32.mrb[1].mxu1 }
 0x101   :  { %v113_v14 = vpop.f32.mrb[2].mxu0  ;;  %v162_v15 = vpop.f32.mrb[2].mxu1 }
 0x102   :  { %v355_v16 = vpop.f32.mrb[3].mxu0  ;;  %v172_v17 = vadd.f32 %v331_v10, %v160_v12  ;;  %v361_v18 = vpop.f32.mrb[3].mxu1 }
 0x104   :  { %v173_v19 = vmax.f32 %v172_v17, 0.0 }
 0x106   :  { %v174_v20 = vpack.c.bf16 %v173_v19, %v173_v19 }
 0x108   :  { %367 = vmatmul.mubr.msk.bf16.vlgmr.msra.gmra.mrb[4].mxu0 %vm198_vm2, %v174_v20 }
 0x1db   :  { %v236_v23 = vpop.f32.mrb[4].mxu0 }
 0x1dc   :  { %v237_v24 = vadd.f32 %v332_v22, %v236_v23  ;;  %v368_v25 = vpop.f32.mrb[5].mxu0 }
 0x1dd   :  { %v239_v26 = vpop.f32.mrb[6].mxu0 }
 0x1de   :  { %v242_v27 = vmax.f32 %v237_v24, 0.0  ;;  %v369_v28 = vpop.f32.mrb[7].mxu0 }
 0x1e0   :  { %v243_v29 = vpack.c.bf16 %v242_v27, %v242_v27 }
 0x1e2   :  { %375 = vmatmul.mubr.msk.bf16.vlgmr.msra.gmra.mrb[4].mxu1 %vm198_vm2, %v243_v29 }
 0x2b5   :  { %v304_v31 = vpop.f32.mrb[4].mxu1 }
 0x2b6   :  { %v305_v32 = vadd.f32 %v336_v30, %v304_v31  ;;  %v376_v33 = vpop.f32.mrb[5].mxu1 }
 0x2b7   :  { %v307_v34 = vpop.f32.mrb[6].mxu1 }
 0x2b8   :  { %310 = vst.msk [vmem:[#allocation7] sm:$0xff] %vm72_vm1, %v305_v32  ;;  %v377_v35 = vpop.f32.mrb[7].mxu1 }
 0x2b9   :  { %446 = shalt.err (!%p443_p6)
}
 0x2ba   :  { %s447_s8 = scalar_lea.hbm %s602_s9, 128 }
 0x2bb   :  { %p448_p7 = scmp.ne.s32.totalorder %s602_s9, %s447_s8  ;;  %p451_p8 = scmp.lt.u32.totalorder %s447_s8, %s602_s9 }
 0x2bd   :  { %p453_p9 = pnand %p451_p8, %p448_p7 }
 0x2bf   :  { %456 = shalt.err (!%p453_p9)
}
 0x2c0   :  { %320 = dma.vmem_to_hbm [thread:$0]  %s318_s27, 128, %s602_s9, [#allocation4]  }
 0x2c1   :  { %461 = dma.done.wait [#allocation4], 128  }
 0x2c2   :  { %462 = vsyncadd [#allocation4], 4294967168 }
 0x2c3   :  { %324 = vsyncpa [#allocation3], 1 }
 0x2c4   :  { %325 = vsyncpa [#allocation6], 1 }
 0x2c5   :  { %326 = vsyncpa [#allocation4], 1 }

</bundles_post_ra>
